<compile_context>
chip_gen: v7x
topology: tpu7x:2x2x1
jax: 0.10.0
libtpu: 0.0.40
codegen_flags: <defaults>
</compile_context>

<pallas_src>
import functools

import jax
import jax.numpy as jnp
import numpy as np
from jax.experimental import pallas as pl
from jax.experimental.pallas import tpu as pltpu


# ---- "config" (synthetic, deterministic) -----------------------------------
class config:
    gamma = 12.0
    ent_dim = 128
    rel_dim = 128     # rel_dim == ent_dim so m * e and r add elementwise
    norm_p = 2        # L_p norm over the embedding dim


_NEG_VMEM_LIMIT = 48 * 1024 * 1024   # total scoped VMEM budget (fits all gens)


# ---- parameter init (xavier_uniform, deterministic) -------------------------
def xavier_uniform(key, shape):
    fan_out, fan_in = shape  # PyTorch: fan_in = size(1), fan_out = size(0)
    bound = float(np.sqrt(6.0 / (fan_in + fan_out)))
    return jax.random.uniform(key, shape, jnp.float32, -bound, bound)


def init_params(key, ent_num, rel_num):
    k1, k2, k3 = jax.random.split(key, 3)
    return {
        "ent_embd": xavier_uniform(k1, (ent_num, config.ent_dim)),  # max_norm=1.0
        "rel_embd": xavier_uniform(k2, (rel_num, config.rel_dim)),  # max_norm=1.0
        "mr":       xavier_uniform(k3, (rel_num, config.rel_dim)),  # no max_norm
    }


def _renorm(x, max_norm=1.0, eps=1e-7):
    # TODO(synk): PyTorch nn.Embedding(max_norm=...) renormalizes the stored
    # weight rows in place at lookup time; here we only renormalize the
    # looked-up rows on the fly (identical for a single forward pass).
    n = jnp.linalg.norm(x, axis=-1, keepdims=True)
    return x * jnp.minimum(1.0, max_norm / jnp.maximum(n, eps))


def _lp_norm(s, norm_p, keepdims=False):
    if norm_p == 2:
        return jnp.sqrt(jnp.sum(s * s, axis=-1, keepdims=keepdims))
    if norm_p == 1:
        return jnp.sum(jnp.abs(s), axis=-1, keepdims=keepdims)
    p = float(norm_p)
    return jnp.power(
        jnp.sum(jnp.power(jnp.abs(s), p), axis=-1, keepdims=keepdims), 1.0 / p)


# ---- tiling ------------------------------------------------------------------
def _choose_tiles(B, N, D, itemsize=4, slot_bytes=4 << 20):
    """Pick (TB, TN).

    TN: lane tile over negatives — multiple of 128 (unmasked vst) or the full
        extent when N < 128.
    TB: batch (sublane) tile — multiple of 8 (or full extent for tiny B),
        sized so one gather slot (TB*TN*D*4 bytes) is ~slot_bytes; capped so
        there are >= 2 batch tiles when B allows it (keeps the "parallel" axis
        splittable across v7x's two TensorCores).  With 2 slots + elementwise
        temporaries this stays well inside v7x's 64 MiB VMEM.
    """
    if N < 128:
        tn = N
    elif N % 128 == 0:
        tn = min(N, 512)
    else:
        tn = 128
    tb = max(8, slot_bytes // max(1, tn * D * itemsize))
    tb = (tb // 8) * 8
    if B >= 16:                                   # keep >= 2 batch tiles
        tb = min(tb, max(8, (B // 2) // 8 * 8))
    if B < 8:
        tb = B                                    # full-extent tiny batch
    else:
        tb = min(tb, max(8, (B // 8) * 8))
    return int(tb), int(tn)


# ---- Pallas kernel: fused gather + renorm + score (negative sampling) --------
def _neg_kernel(ids_ref,               # SMEM (B, N) int32  (scalar prefetch)
                a_ref, m_ref,          # VMEM (TB, D) f32
                ent_ref,               # HBM  (E, D) f32    (memory_space=ANY)
                o_ref,                 # VMEM (TB, TN) f32
                gbuf, sem,             # scratch: (2, TB, TN, D) f32, DMA (2,)
                *, gamma, norm_p, sign, B, N):
    _, TB, TN, D = gbuf.shape
    b = pl.program_id(0)
    n = pl.program_id(1)
    nn = pl.num_programs(1)
    slot = n % 2

    def fetch(nblk, slot_):
        # Gather the TB*TN entity rows of output block (b, nblk) into
        # gbuf[slot_] with one row-DMA per (i, j).  Indices are clamped so
        # ragged edge tiles never issue an out-of-bounds HBM DMA.
        @pl.loop(0, TB * TN)
        def _(k):
            i = k // TN
            j = k % TN
            row = jnp.minimum(b * TB + i, B - 1)
            col = jnp.minimum(nblk * TN + j, N - 1)
            idx = ids_ref[row, col]
            pltpu.make_async_copy(
                ent_ref.at[pl.ds(idx, 1), :],
                gbuf.at[slot_, i, pl.ds(j, 1), :],
                sem.at[slot_]).start()

    def drain(slot_):
        # One wait per issued copy (all copies are the same size).
        @pl.loop(0, TB * TN)
        def _(k):
            pltpu.make_async_copy(
                ent_ref.at[pl.ds(0, 1), :],
                gbuf.at[0, 0, pl.ds(0, 1), :],
                sem.at[slot_]).wait()

    # Prime the pipeline at the start of each batch row (n == 0): every
    # batch tile is self-contained, so the "parallel" axis 0 can be split
    # across TensorCores safely.
    @pl.when(n == 0)
    def _():
        fetch(n, slot)

    drain(slot)

    # Prefetch the next N-tile's rows while we score the current one.
    @pl.when(n + 1 < nn)
    def _():
        fetch(n + 1, 1 - slot)

    e = gbuf[slot]                                        # (TB, TN, D)
    # In-kernel renorm (ent_embd has max_norm = 1.0).
    en = jnp.sqrt(jnp.sum(e * e, axis=-1, keepdims=True))
    e = e * jnp.minimum(1.0, 1.0 / jnp.maximum(en, 1e-7))

    a = a_ref[...][:, None, :]                            # (TB, 1, D)
    m = m_ref[...][:, None, :]
    if sign >= 0:
        s = m * e + a            # head-batch:  m*neg + (r - m*t)
    else:
        s = a - m * e            # tail-batch:  (m*h + r) - m*neg

    o_ref[...] = _lp_norm(s, norm_p) - gamma


def _score_neg_fused(a, m, ent_embd, neg_sample, *, gamma, norm_p, sign,
                     tiles=None):
    """a, m: (B, D) f32 (un-broadcast); ent_embd: (E, D) f32 (stays in HBM);
    neg_sample: (B, N) int32.  Returns (B, N) scores."""
    B, D = a.shape
    N = neg_sample.shape[1]
    TB, TN = tiles if tiles is not None else _choose_tiles(B, N, D)
    nb = pl.cdiv(B, TB)
    nn = pl.cdiv(N, TN)

    kernel = functools.partial(_neg_kernel, gamma=float(gamma), norm_p=norm_p,
                               sign=sign, B=B, N=N)

    grid_spec = pltpu.PrefetchScalarGridSpec(
        num_scalar_prefetch=1,
        grid=(nb, nn),
        in_specs=[
            pl.BlockSpec((TB, D), lambda b, n, ids: (b, 0)),   # a (base)
            pl.BlockSpec((TB, D), lambda b, n, ids: (b, 0)),   # m (projection)
            pl.BlockSpec(memory_space=pl.ANY),                 # ent_embd (HBM)
        ],
        out_specs=pl.BlockSpec((TB, TN), lambda b, n, ids: (b, n)),
        scratch_shapes=[
            pltpu.VMEM((2, TB, TN, D), jnp.float32),           # gather slots
            pltpu.SemaphoreType.DMA((2,)),
        ],
    )

    return pl.pallas_call(
        kernel,
        out_shape=jax.ShapeDtypeStruct((B, N), jnp.float32),
        grid_spec=grid_spec,
        compiler_params=pltpu.CompilerParams(
            dimension_semantics=("parallel", "arbitrary"),
            vmem_limit_bytes=_NEG_VMEM_LIMIT),
    )(neg_sample.astype(jnp.int32),
      a.astype(jnp.float32),
      m.astype(jnp.float32),
      ent_embd.astype(jnp.float32))


# ---- Pallas kernel: positive-triple score ------------------------------------
def _pos_kernel(a_ref, m_ref, t_ref, o_ref, *, gamma, norm_p):
    s = a_ref[...] - m_ref[...] * t_ref[...]              # (TB, D)
    o_ref[...] = _lp_norm(s, norm_p, keepdims=True) - gamma


def _score_pos(a, m, t, *, gamma, norm_p):
    B, D = a.shape
    TB = B if B < 8 else min(256, (B // 8) * 8)
    nb = pl.cdiv(B, TB)
    kernel = functools.partial(_pos_kernel, gamma=float(gamma), norm_p=norm_p)
    return pl.pallas_call(
        kernel,
        out_shape=jax.ShapeDtypeStruct((B, 1), jnp.float32),
        grid=(nb,),
        in_specs=[pl.BlockSpec((TB, D), lambda b: (b, 0))] * 3,
        out_specs=pl.BlockSpec((TB, 1), lambda b: (b, 0)),
        compiler_params=pltpu.CompilerParams(
            dimension_semantics=("parallel",)),
    )(a.astype(jnp.float32), m.astype(jnp.float32), t.astype(jnp.float32))


# ---- forward (matches SimpleTransR.forward semantics) ------------------------
def simple_transr_forward(params, pos_sample, neg_sample=None, mode=None,
                          neg_tiles=None):
    ent_embd, rel_embd, mr = params["ent_embd"], params["rel_embd"], params["mr"]

    h = _renorm(ent_embd[pos_sample[:, 0]])      # (B, D)  ent_embd: max_norm=1.0
    r = _renorm(rel_embd[pos_sample[:, 1]])      # (B, D)  rel_embd: max_norm=1.0
    t = _renorm(ent_embd[pos_sample[:, 2]])      # (B, D)
    m = mr[pos_sample[:, 1]]                     # (B, D)  mr: no max_norm

    if neg_sample is None:
        a = m * h + r                            # score_vec = a - m*t
        return _score_pos(a, m, t, gamma=config.gamma, norm_p=config.norm_p)

    if mode == "head-batch":
        a = r - m * t                            # score_vec = m*neg + a
        sign = +1
    elif mode == "tail-batch":
        a = m * h + r                            # score_vec = a - m*neg
        sign = -1
    else:
        raise ValueError("mode %s not supported" % mode)

    # Fused path: the (B, N, D) gather/renorm never touches HBM.
    return _score_neg_fused(a, m, ent_embd, neg_sample, gamma=config.gamma,
                            norm_p=config.norm_p, sign=sign, tiles=neg_tiles)


# ---- pure-JAX reference (mirrors the PyTorch forward) ------------------------
def _forward_ref(params, pos_sample, neg_sample=None, mode=None):
    ent_embd, rel_embd, mr = params["ent_embd"], params["rel_embd"], params["mr"]
    h = _renorm(ent_embd[pos_sample[:, 0]])[:, None, :]
    r = _renorm(rel_embd[pos_sample[:, 1]])[:, None, :]
    t = _renorm(ent_embd[pos_sample[:, 2]])[:, None, :]
    m = mr[pos_sample[:, 1]][:, None, :]
    if neg_sample is not None:
        neg = _renorm(ent_embd[neg_sample])
        if mode == "head-batch":
            score = m * neg + (r - m * t)
        elif mode == "tail-batch":
            score = m * h + r - m * neg
        else:
            raise ValueError(mode)
    else:
        score = m * h + r - m * t
    return _lp_norm(score, config.norm_p) - config.gamma


if __name__ == "__main__":
    # --- small demo shapes -----------------------------------------------------
    ent_num, rel_num = 10, 5
    B, N = 4, 8

    key = jax.random.PRNGKey(0)
    kp, k_pos, k_neg = jax.random.split(key, 3)
    params = init_params(kp, ent_num, rel_num)

    heads = jax.random.randint(k_pos, (B,), 0, ent_num)
    rels = jax.random.randint(jax.random.fold_in(k_pos, 1), (B,), 0, rel_num)
    tails = jax.random.randint(jax.random.fold_in(k_pos, 2), (B,), 0, ent_num)
    pos_sample = jnp.stack([heads, rels, tails], axis=1).astype(jnp.int32)   # (B, 3)
    neg_sample = jax.random.randint(k_neg, (B, N), 0, ent_num).astype(jnp.int32)

    score_pos = simple_transr_forward(params, pos_sample)
    jax.block_until_ready(score_pos)
    score_tail = simple_transr_forward(params, pos_sample, neg_sample,
                                       mode="tail-batch")
    jax.block_until_ready(score_tail)
    score_head = simple_transr_forward(params, pos_sample, neg_sample,
                                       mode="head-batch")
    jax.block_until_ready(score_head)

    ref_pos = _forward_ref(params, pos_sample)
    ref_tail = _forward_ref(params, pos_sample, neg_sample, mode="tail-batch")
    ref_head = _forward_ref(params, pos_sample, neg_sample, mode="head-batch")
    np.testing.assert_allclose(np.asarray(score_pos), np.asarray(ref_pos),
                               rtol=1e-5, atol=1e-4)
    np.testing.assert_allclose(np.asarray(score_tail), np.asarray(ref_tail),
                               rtol=1e-5, atol=1e-4)
    np.testing.assert_allclose(np.asarray(score_head), np.asarray(ref_head),
                               rtol=1e-5, atol=1e-4)

    assert score_pos.shape == (B, 1)
    assert score_tail.shape == (B, N)
    assert score_head.shape == (B, N)

    # --- second config: exercises ragged batch tiles, lane-tiled N and the
    #     cross-step gather prefetch (grid = (2, 2) via forced (TB, TN)=(8,128)).
    ent_num2, rel_num2 = 64, 7
    B2, N2 = 12, 256
    kp2, k_pos2, k_neg2 = jax.random.split(jax.random.fold_in(key, 123), 3)
    params2 = init_params(kp2, ent_num2, rel_num2)
    heads2 = jax.random.randint(k_pos2, (B2,), 0, ent_num2)
    rels2 = jax.random.randint(jax.random.fold_in(k_pos2, 1), (B2,), 0, rel_num2)
    tails2 = jax.random.randint(jax.random.fold_in(k_pos2, 2), (B2,), 0, ent_num2)
    pos2 = jnp.stack([heads2, rels2, tails2], axis=1).astype(jnp.int32)
    neg2 = jax.random.randint(k_neg2, (B2, N2), 0, ent_num2).astype(jnp.int32)

    s2 = simple_transr_forward(params2, pos2, neg2, mode="tail-batch",
                               neg_tiles=(8, 128))
    jax.block_until_ready(s2)
    r2 = _forward_ref(params2, pos2, neg2, mode="tail-batch")
    np.testing.assert_allclose(np.asarray(s2), np.asarray(r2),
                               rtol=1e-5, atol=1e-4)
    assert s2.shape == (B2, N2)

    print("KERNEL_OK")
</pallas_src>

<mosaic_0001>
module attributes {stable_mosaic.version = 11 : i64} {
  func.func @_pos_kernel(%arg0: i32, %arg1: memref<4x128xf32, #tpu.memory_space<vmem>>, %arg2: memref<4x128xf32, #tpu.memory_space<vmem>>, %arg3: memref<4x128xf32, #tpu.memory_space<vmem>>, %arg4: memref<4x1xf32, #tpu.memory_space<vmem>>) attributes {dimension_semantics = [#tpu.dimension_semantics<parallel>], iteration_bounds = array<i64: 1>, scalar_prefetch = 0 : i64, scratch_operands = 0 : i64, tpu.core_type = #tpu.core_type<tc>, window_params = [{transform_indices = @transform_0, window_bounds = array<i64: 4, 128>}, {transform_indices = @transform_1, window_bounds = array<i64: 4, 128>}, {transform_indices = @transform_2, window_bounds = array<i64: 4, 128>}, {transform_indices = @transform_3, window_bounds = array<i64: 4, 1>}]} {
    %c0 = arith.constant 0 : index
    %c0_0 = arith.constant 0 : index
    %0 = vector.load %arg1[%c0, %c0_0] : memref<4x128xf32, #tpu.memory_space<vmem>>, vector<4x128xf32>
    %c0_1 = arith.constant 0 : index
    %c0_2 = arith.constant 0 : index
    %1 = vector.load %arg2[%c0_1, %c0_2] : memref<4x128xf32, #tpu.memory_space<vmem>>, vector<4x128xf32>
    %c0_3 = arith.constant 0 : index
    %c0_4 = arith.constant 0 : index
    %2 = vector.load %arg3[%c0_3, %c0_4] : memref<4x128xf32, #tpu.memory_space<vmem>>, vector<4x128xf32>
    %3 = arith.mulf %1, %2 : vector<4x128xf32>
    %4 = arith.subf %0, %3 : vector<4x128xf32>
    %5 = arith.mulf %4, %4 : vector<4x128xf32>
    %cst = arith.constant dense<0.000000e+00> : vector<4xf32>
    %6 = vector.multi_reduction <add>, %5, %cst [1] : vector<4x128xf32> to vector<4xf32>
    %7 = vector.shape_cast %6 : vector<4xf32> to vector<4x1xf32>
    %8 = math.sqrt %7 : vector<4x1xf32>
    %cst_5 = arith.constant 1.200000e+01 : f32
    %9 = vector.broadcast %cst_5 : f32 to vector<4x1xf32>
    %10 = arith.subf %8, %9 : vector<4x1xf32>
    %c0_6 = arith.constant 0 : index
    %c0_7 = arith.constant 0 : index
    %11 = vector.load %arg4[%c0_6, %c0_7] : memref<4x1xf32, #tpu.memory_space<vmem>>, vector<4x1xf32>
    tpu.vector_store %arg4[%c0_6, %c0_7], %10 {strides = array<i32>} : memref<4x1xf32, #tpu.memory_space<vmem>>, vector<4x1xf32>,
    return
  }
  func.func @transform_0(%arg0: i32) -> (i32, i32) {
    %c0_i32 = arith.constant 0 : i32
    %c0_i32_0 = arith.constant 0 : i32
    return %arg0, %c0_i32 : i32, i32
  }
  func.func @transform_1(%arg0: i32) -> (i32, i32) {
    %c0_i32 = arith.constant 0 : i32
    %c0_i32_0 = arith.constant 0 : i32
    return %arg0, %c0_i32 : i32, i32
  }
  func.func @transform_2(%arg0: i32) -> (i32, i32) {
    %c0_i32 = arith.constant 0 : i32
    %c0_i32_0 = arith.constant 0 : i32
    return %arg0, %c0_i32 : i32, i32
  }
  func.func @transform_3(%arg0: i32) -> (i32, i32) {
    %c0_i32 = arith.constant 0 : i32
    %c0_i32_0 = arith.constant 0 : i32
    return %arg0, %c0_i32 : i32, i32
  }
}

</mosaic_0001>

<bundles_post_ra>
// kernel: tpu_custom_call.1
= control target key start
LH: loop header
LB: loop body
LE: loop exit
PB: predicated region body
PF: predicated region fallthrough
CT: control target
= control target key end

     0   :  { %8 = vsyncpa [#allocation3], 0  ;;  %s169_s0 = inlined_call_operand.hbm [shape: f32[4,128], index: 0, kind: input, shape index: {}]   ;;  %s170_s1 = inlined_call_operand.hbm [shape: f32[4,128], index: 1, kind: input, shape index: {}]   ;;  %s171_s2 = inlined_call_operand.vmem [shape: f32[4,128], index: 2, kind: input, shape index: {}]   ;;  %s172_s3 = inlined_call_operand.vmem [shape: f32[4,1], index: 3, kind: output, shape index: {}]  }
   0x1   :  { %9 = vsyncpa [#allocation5], 0  ;;  %s117_s12 = smov [#allocation2]   ;;  %s118_s14 = smov [#allocation4]  }
   0x2   :  { %s16_s13 = sshll.u32 %s117_s12, 4  ;;  %s26_s15 = sshll.u32 %s118_s14, 4  ;;  %s17_s13 = int_to_ptr.vmem [resolvable:$true] %s16_s13  ;;  %s27_s15 = int_to_ptr.vmem [resolvable:$true] %s26_s15 }
   0x3   :  { %s69_s18 = scalar_lea.hbm %s169_s0, 64 }
   0x4   :  { %p70_p0 = scmp.ne.s32.totalorder %s169_s0, %s69_s18  ;;  %p73_p1 = scmp.lt.u32.totalorder %s69_s18, %s169_s0 }
   0x6   :  { %p75_p2 = pnand %p73_p1, %p70_p0 }
   0x8   :  { %78 = shalt.err (!%p75_p2)
}
   0x9   :  { %s79_s23 = scalar_lea.vmem %s17_s13, 64  ;;  %p84_p4 = scmp.lt.s32.totalorder %s17_s13, %s17_s13 }
   0xa   :  { %p80_p3 = scmp.ne.s32.totalorder %s17_s13, %s79_s23  ;;  %p85_p5 = scmp.lt.s32.totalorder %s79_s23, %s79_s23 }
   0xc   :  { %p86_p6 = por %p85_p5, %p84_p4 }
   0xe   :  { %p87_p7 = pnand %p86_p6, %p80_p3 }
  0x10   :  { %90 = shalt.err (!%p87_p7)
}
  0x11   :  { %19 = dma.hbm_to_vmem [thread:$0]  %s169_s0, 64, %s17_s13, [#allocation3]  }
  0x12   :  { %s91_s28 = scalar_lea.hbm %s170_s1, 64 }
  0x13   :  { %p92_p8 = scmp.ne.s32.totalorder %s170_s1, %s91_s28  ;;  %p95_p9 = scmp.lt.u32.totalorder %s91_s28, %s170_s1 }
  0x15   :  { %p97_p10 = pnand %p95_p9, %p92_p8 }
  0x17   :  { %100 = shalt.err (!%p97_p10)
}
  0x18   :  { %s101_s6 = scalar_lea.vmem %s27_s15, 64  ;;  %p106_p12 = scmp.lt.s32.totalorder %s27_s15, %s27_s15 }
  0x19   :  { %p102_p11 = scmp.ne.s32.totalorder %s27_s15, %s101_s6  ;;  %p107_p13 = scmp.lt.s32.totalorder %s101_s6, %s101_s6 }
  0x1b   :  { %p108_p0 = por %p107_p13, %p106_p12 }
  0x1d   :  { %p109_p1 = pnand %p108_p0, %p102_p11 }
  0x1f   :  { %112 = shalt.err (!%p109_p1)
}
  0x20   :  { %29 = dma.hbm_to_vmem [thread:$0]  %s170_s1, 64, %s27_s15, [#allocation5]  }
  0x21   :  { %113 = dma.done.wait [#allocation3], 64  }
  0x22   :  { %114 = vsyncadd [#allocation3], 4294967232 }
  0x23   :  { %115 = dma.done.wait [#allocation5], 64  }
  0x24   :  { %116 = vsyncadd [#allocation5], 4294967232  ;;  %v38_v0 = vld [vmem:[#allocation2] sm:$0xf]  ;;  %v39_v1 = vld [vmem:[#allocation4] sm:$0xf] }
  0x25   :  { %v40_v2 = vld [vmem:[%s171_s2] sm:$0xf]  ;;  %vm44_vm0 = vcmask 1043456   ;;  %vm56_vm3 = vcmask 3072  }
  0x26   :  { %v41_v3 = vmul.f32 %v40_v2, %v39_v1 }
  0x28   :  { %v42_v4 = vsub.f32 %v38_v0, %v41_v3 }
  0x2a   :  { %v43_v5 = vmul.f32 %v42_v4, %v42_v4 }
  0x2c   :  { %v45_v6 = vsel %vm44_vm0, %v43_v5, 0.0 }
  0x2d   :  { %46 = vadd.xlane.f32.xlu0 %v45_v6 }
  0xba   :  { %v47_v7 = vpop.xlane.xlu0 %46 }
  0xbb   :  { %67 = vrsqrt.f32 %v47_v7  ;;  %vm50_vm1 = vcmp.eq.f32.partialorder %v47_v7, inf  ;;  %v53_v10 = vand.u32 2147483648, %v47_v7  ;;  %vm52_vm2 = vcmp.eq.f32.partialorder %v47_v7, 0.0 }
  0xc5   :  { %v68_v8 = vpop.eup %67 }
  0xc6   :  { %v49_v9 = vmul.f32 %v68_v8, %v47_v7 }
  0xc8   :  { %v51_v11 = vsel %vm50_vm1, %v47_v7, %v49_v9 }
  0xc9   :  { %v54_v12 = vsel %vm52_vm2, %v53_v10, %v51_v11 }
  0xca   :  { %v64_v13 = vadd.f32 -12.0, %v54_v12 }
  0xcc   :  { %57 = vst.msk [vmem:[%s172_s3] sm:$0xf] %vm56_vm3, %v64_v13 }
  0xcd   :  { %62 = vsyncpa [#allocation3], 1 }
  0xce   :  { %63 = vsyncpa [#allocation5], 1 }

</bundles_post_ra>
